<compile_context>
chip_gen: v6e
topology: v6e:2x2x1
jax: 0.10.0
libtpu: 0.0.40
codegen_flags: <defaults>
</compile_context>

<pallas_src>
import functools

import jax
import jax.numpy as jnp
import numpy as np
from jax.experimental import pallas as pl
from jax.experimental.pallas import tpu as pltpu


def _round_up(x, m):
    return ((x + m - 1) // m) * m


def _tensorcores_per_chip():
    """Best-effort detection of TensorCores per chip (v7x has 2)."""
    try:
        kind = jax.devices()[0].device_kind.lower()
    except Exception:
        return 1
    return 2 if "v7" in kind else 1


# --------------------------------------------------------------------------
# Bahdanau key-projection cache:  cache = reshape(ctx, (B*S, C)) @ Wk
# (step-invariant; a decode loop pays this once per sequence, not per step)
# --------------------------------------------------------------------------
def _cache_kernel(ctx2d_ref, wk_ref, out_ref):
    out_ref[...] = jnp.dot(ctx2d_ref[...], wk_ref[...],
                           preferred_element_type=jnp.float32).astype(out_ref.dtype)


def compute_cache_pallas(context, wk, *, out_dtype=None):
    B, S, C = context.shape
    A = wk.shape[-1]
    out_dtype = out_dtype if out_dtype is not None else wk.dtype
    rows = B * S
    ctx2d = context.reshape(rows, C).astype(wk.dtype)
    tr = rows if rows <= 512 else 512            # 512 is a multiple of 8
    cache2d = pl.pallas_call(
        _cache_kernel,
        out_shape=jax.ShapeDtypeStruct((rows, A), out_dtype),
        grid=(pl.cdiv(rows, tr),),
        in_specs=[pl.BlockSpec((tr, C), lambda i: (i, 0)),
                  pl.BlockSpec((C, A), lambda i: (0, 0))],
        out_specs=pl.BlockSpec((tr, A), lambda i: (i, 0)),
        compiler_params=pltpu.CompilerParams(
            dimension_semantics=("parallel",),
            vmem_limit_bytes=64 * 1024 * 1024),
    )(ctx2d, wk)
    return cache2d.reshape(B, S, A)


# --------------------------------------------------------------------------
# In-kernel GRU cell: two dots (no concat), exact PyTorch nn.GRUCell math.
# Activations are cast to the (possibly bf16) weight dtype only at the dot;
# accumulation and all elementwise math stay f32.
# --------------------------------------------------------------------------
def _gru_cell(x, h, w_ih_ref, w_hh_ref, b_ih_ref, b_hh_ref):
    H = w_hh_ref.shape[0]
    w_ih = w_ih_ref[...]
    w_hh = w_hh_ref[...]
    gi = jnp.dot(x.astype(w_ih.dtype), w_ih,
                 preferred_element_type=jnp.float32) + b_ih_ref[...]
    gh = jnp.dot(h.astype(w_hh.dtype), w_hh,
                 preferred_element_type=jnp.float32) + b_hh_ref[...]
    r = jax.nn.sigmoid(gi[:, :H] + gh[:, :H])
    z = jax.nn.sigmoid(gi[:, H:2 * H] + gh[:, H:2 * H])
    n = jnp.tanh(gi[:, 2 * H:] + r * gh[:, 2 * H:])
    return (1.0 - z) * n + z * h


# --------------------------------------------------------------------------
# Per-step kernel
# --------------------------------------------------------------------------
def cgru_kernel(x_ref, state_ref, ctx_ref, mask_ref, cache_ref,
                w_ih1_ref, w_hh1_ref, b_ih1_ref, b_hh1_ref,
                wq_ref, bq_ref, v_ref,
                w_ih2_ref, w_hh2_ref, b_ih2_ref, b_hh2_ref,
                out_ref, *, approx_recip):
    H = w_hh1_ref.shape[0]
    C = ctx_ref.shape[-1]

    # Recurrent state lives in cols [0:H) of the lane-dense state slab.
    h = state_ref[...][:, :H]                    # [tb, H]
    x = x_ref[...]                               # [tb, In]

    # ---- gru1: hidden1 = GRUCell(input, hidden) ----
    h1 = _gru_cell(x, h, w_ih1_ref, w_hh1_ref, b_ih1_ref, b_hh1_ref)

    # ---- Bahdanau attention(query=hidden1, memory=context, cache=key_proj) ----
    wq = wq_ref[...]
    q = jnp.dot(h1.astype(wq.dtype), wq,
                preferred_element_type=jnp.float32) + bq_ref[...]      # [tb, A]
    cache = cache_ref[...].astype(jnp.float32)                         # [tb, S, A]
    th = jnp.tanh(q[:, None, :] + cache)                               # [tb, S, A]
    v = v_ref[...].astype(jnp.float32)                                 # [1, A]
    logits = jnp.sum(th * v[:, None, :], axis=-1)                      # [tb, S]
    mask = mask_ref[...]                                               # 1.0 = pad
    logits = jnp.where(mask > 0.5, -1e9, logits)                       # masked_fill
    m = jnp.max(logits, axis=-1, keepdims=True)
    e = jnp.exp(logits - m)
    w = e * pl.reciprocal(jnp.sum(e, axis=-1, keepdims=True), approx=approx_recip)
    ctx = ctx_ref[...].astype(jnp.float32)
    attn = jnp.sum(w[:, :, None] * ctx, axis=1)                        # [tb, C]

    # ---- gru2: hidden2 = GRUCell(attn_values, hidden1) ----
    h2 = _gru_cell(attn, h1, w_ih2_ref, w_hh2_ref, b_ih2_ref, b_hh2_ref)

    # ---- single lane-dense packed output slab [tb, P]: [h2 | attn | 0] ----
    tb = h2.shape[0]
    P = out_ref.shape[-1]
    pad = P - (H + C)
    pieces = [h2, attn]
    if pad:
        pieces.append(jnp.zeros((tb, pad), jnp.float32))
    out_ref[...] = jnp.concatenate(pieces, axis=-1)


def _pick_batch_tile(B, per_row_bytes, *, budget_bytes, cap, min_programs):
    """Largest multiple-of-8 batch tile fitting the VMEM budget; on multi-TC
    chips cap so the 'parallel' batch axis has >= min_programs programs."""
    tb = max(8, min(cap, ((budget_bytes // max(per_row_bytes, 1)) // 8) * 8))
    if min_programs > 1 and B >= 8 * min_programs:
        tb = min(tb, _round_up(pl.cdiv(B, min_programs), 8))
    return B if B <= tb else tb


def cgru_cell_pallas(x, hidden, context, context_mask, params, cache=None,
                     *, stream_dtype=jnp.float32):
    (w_ih1, w_hh1, b_ih1, b_hh1, wq, bq, wk, v,
     w_ih2, w_hh2, b_ih2, b_hh2) = params
    B, In = x.shape
    H = hidden.shape[-1]
    _, S, C = context.shape
    A = wk.shape[-1]
    P = _round_up(H + C, 128)                    # lane-dense packed output width
    sd = jnp.dtype(stream_dtype)

    # Big streamed operands optionally in bf16 (f32 accumulation in-kernel).
    # In a decode loop these casts / compute_cache are one-time, not per-step.
    w_ih1s, w_hh1s = w_ih1.astype(sd), w_hh1.astype(sd)
    w_ih2s, w_hh2s = w_ih2.astype(sd), w_hh2.astype(sd)
    wqs = wq.astype(sd)
    ctxs = context.astype(sd)

    if cache is None:
        cache = compute_cache_pallas(context, wk.astype(sd), out_dtype=sd)

    if context_mask is None:
        context_mask = jnp.zeros((B, S), jnp.float32)
    mask = context_mask.astype(jnp.float32)

    # Recurrent state in a lane-dense [B, P] slab (cols [0:H) = hidden),
    # aliased to the packed output slab.
    state = jnp.pad(hidden.astype(jnp.float32), ((0, 0), (0, P - H)))

    n_tc = _tensorcores_per_chip()
    esz = sd.itemsize
    per_row_bytes = (2 * (4 * In + 4 * P + esz * S * C + 4 * S + esz * S * A)
                     + 2 * 4 * P)                # double-buffered ins + out
    budget = (24 if n_tc > 1 else 32) * 1024 * 1024
    vmem_limit = (48 if n_tc > 1 else 64) * 1024 * 1024
    tb = _pick_batch_tile(B, per_row_bytes, budget_bytes=budget, cap=512,
                          min_programs=n_tc)
    grid = (pl.cdiv(B, tb),)

    row = lambda i: (i, 0)
    row3 = lambda i: (i, 0, 0)
    rep = lambda i: (0, 0)

    in_specs = [
        pl.BlockSpec((tb, In), row),             # x
        pl.BlockSpec((tb, P), row),              # state slab (hidden in cols [0:H))
        pl.BlockSpec((tb, S, C), row3),          # context
        pl.BlockSpec((tb, S), row),              # raw mask (1.0 = pad)
        pl.BlockSpec((tb, S, A), row3),          # key-projection cache
        pl.BlockSpec(w_ih1.shape, rep), pl.BlockSpec(w_hh1.shape, rep),
        pl.BlockSpec(b_ih1.shape, rep), pl.BlockSpec(b_hh1.shape, rep),
        pl.BlockSpec(wq.shape, rep), pl.BlockSpec(bq.shape, rep),
        pl.BlockSpec(v.shape, rep),
        pl.BlockSpec(w_ih2.shape, rep), pl.BlockSpec(w_hh2.shape, rep),
        pl.BlockSpec(b_ih2.shape, rep), pl.BlockSpec(b_hh2.shape, rep),
    ]
    out_specs = pl.BlockSpec((tb, P), row)

    kernel = functools.partial(cgru_kernel,
                               approx_recip=(sd != jnp.dtype(jnp.float32)))

    slab = pl.pallas_call(
        kernel,
        out_shape=jax.ShapeDtypeStruct((B, P), jnp.float32),
        grid=grid,
        in_specs=in_specs,
        out_specs=out_specs,
        input_output_aliases={1: 0},             # state slab reused for output slab
        compiler_params=pltpu.CompilerParams(
            dimension_semantics=("parallel",),
            vmem_limit_bytes=vmem_limit),
    )(x, state, ctxs, mask, cache,
      w_ih1s, w_hh1s, b_ih1, b_hh1, wqs, bq, v,
      w_ih2s, w_hh2s, b_ih2, b_hh2)

    h2 = slab[:, :H]
    attn = slab[:, H:H + C]
    # Match the PyTorch module's return structure: ((hidden2, attn_values), hidden2)
    return (h2, attn), h2


# ---------- pure-JAX reference (PyTorch semantics, where-masking) ----------
def _gru_cell_ref(x, h, w_ih_t, w_hh_t, b_ih, b_hh, H):
    gi = jnp.dot(x, w_ih_t) + b_ih
    gh = jnp.dot(h, w_hh_t) + b_hh
    r = jax.nn.sigmoid(gi[:, :H] + gh[:, :H])
    z = jax.nn.sigmoid(gi[:, H:2 * H] + gh[:, H:2 * H])
    n = jnp.tanh(gi[:, 2 * H:] + r * gh[:, 2 * H:])
    return (1.0 - z) * n + z * h


def cgru_cell_ref(x, h, ctx, mask, params):
    (w_ih1, w_hh1, b_ih1, b_hh1, wq, bq, wk, v,
     w_ih2, w_hh2, b_ih2, b_hh2) = params
    H = h.shape[-1]
    h1 = _gru_cell_ref(x, h, w_ih1, w_hh1, b_ih1, b_hh1, H)
    key_proj = jnp.einsum('bsc,ca->bsa', ctx, wk)
    q = h1 @ wq + bq
    logits = jnp.sum(jnp.tanh(q[:, None, :] + key_proj) * v[:, None, :], axis=-1)
    logits = jnp.where(mask > 0.5, -1e9, logits)
    w = jax.nn.softmax(logits, axis=-1)
    attn = jnp.einsum('bs,bsc->bc', w, ctx)
    h2 = _gru_cell_ref(attn, h1, w_ih2, w_hh2, b_ih2, b_hh2, H)
    return (h2, attn), h2


def init_params(key, input_size, hidden_size, context_size):
    """Deterministic synthetic init (stand-in for my_init.rnn_init)."""
    H, In, C = hidden_size, input_size, context_size
    A = C  # BahdanauAttention hidden size defaults to key_size (= context_size)
    ks = jax.random.split(key, 12)
    u = lambda k_, shape, s: jax.random.uniform(k_, shape, jnp.float32, -s, s)
    sH, sC, sA = 1.0 / np.sqrt(H), 1.0 / np.sqrt(C), 1.0 / np.sqrt(A)
    # GRU weights stored pre-transposed: PyTorch weight_ih [3H, In] -> here [In, 3H]
    return (
        u(ks[0], (In, 3 * H), sH), u(ks[1], (H, 3 * H), sH),   # gru1 w_ih^T, w_hh^T
        u(ks[2], (1, 3 * H), sH),  u(ks[3], (1, 3 * H), sH),   # gru1 b_ih, b_hh
        u(ks[4], (H, A), sH),      u(ks[5], (1, A), sH),       # attn W_query, b_query
        u(ks[6], (C, A), sC),      u(ks[7], (1, A), sA),       # attn W_key, v
        u(ks[8], (C, 3 * H), sH),  u(ks[9], (H, 3 * H), sH),   # gru2 w_ih^T, w_hh^T
        u(ks[10], (1, 3 * H), sH), u(ks[11], (1, 3 * H), sH),  # gru2 b_ih, b_hh
    )


if __name__ == "__main__":
    B, In, H, C, S = 2, 16, 32, 16, 8

    key = jax.random.PRNGKey(0)
    k_x, k_h, k_ctx, k_p = jax.random.split(key, 4)
    x = jax.random.normal(k_x, (B, In), jnp.float32)
    hidden = jax.random.normal(k_h, (B, H), jnp.float32)
    context = jax.random.normal(k_ctx, (B, S, C), jnp.float32)
    # mask: 1.0 = padded position; pad the last two positions of batch 1
    context_mask = jnp.zeros((B, S), jnp.float32).at[1, -2:].set(1.0)

    params = init_params(k_p, In, H, C)

    (h2_r, attn_r), _ = cgru_cell_ref(x, hidden, context, context_mask, params)

    # ---- exact f32 path ----
    step = jax.jit(cgru_cell_pallas)
    (h2, attn), h2_again = step(x, hidden, context, context_mask, params)
    jax.block_until_ready((h2, attn))
    np.testing.assert_allclose(np.asarray(h2), np.asarray(h2_r), rtol=1e-5, atol=1e-5)
    np.testing.assert_allclose(np.asarray(attn), np.asarray(attn_r), rtol=1e-5, atol=1e-5)
    np.testing.assert_allclose(np.asarray(h2_again), np.asarray(h2), rtol=0, atol=0)
    assert h2.shape == (B, H) and attn.shape == (B, C)

    # ---- bf16-streamed path (production config: half the weight/context/cache traffic) ----
    step_bf16 = jax.jit(functools.partial(cgru_cell_pallas, stream_dtype=jnp.bfloat16))
    (h2b, attnb), _ = step_bf16(x, hidden, context, context_mask, params)
    jax.block_until_ready((h2b, attnb))
    np.testing.assert_allclose(np.asarray(h2b), np.asarray(h2_r), rtol=5e-2, atol=5e-2)
    np.testing.assert_allclose(np.asarray(attnb), np.asarray(attn_r), rtol=5e-2, atol=5e-2)

    print("KERNEL_OK")
</pallas_src>

<mosaic_0001>
module attributes {stable_mosaic.version = 11 : i64} {
  func.func @_cache_kernel(%arg0: i32, %arg1: memref<16x16xf32, #tpu.memory_space<vmem>>, %arg2: memref<16x16xf32, #tpu.memory_space<vmem>>, %arg3: memref<16x16xf32, #tpu.memory_space<vmem>>) attributes {dimension_semantics = [#tpu.dimension_semantics<parallel>], iteration_bounds = array<i64: 1>, scalar_prefetch = 0 : i64, scratch_operands = 0 : i64, tpu.core_type = #tpu.core_type<tc>, window_params = [{transform_indices = @transform_0, window_bounds = array<i64: 16, 16>}, {pipeline_mode = #tpu.pipeline_mode<synchronous>, transform_indices = @transform_1, window_bounds = array<i64: 16, 16>}, {transform_indices = @transform_2, window_bounds = array<i64: 16, 16>}]} {
    %c0 = arith.constant 0 : index
    %c0_0 = arith.constant 0 : index
    %0 = vector.load %arg1[%c0, %c0_0] : memref<16x16xf32, #tpu.memory_space<vmem>>, vector<16x16xf32>
    %c0_1 = arith.constant 0 : index
    %c0_2 = arith.constant 0 : index
    %1 = vector.load %arg2[%c0_1, %c0_2] : memref<16x16xf32, #tpu.memory_space<vmem>>, vector<16x16xf32>
    %cst = arith.constant dense<0.000000e+00> : vector<16x16xf32>
    %2 = tpu.matmul %0, %1, %cst {dimension_numbers = #tpu.dot_dimension_numbers<[1], [0], [0], [1], [0, 0, 1, 1], [], []>} : vector<16x16xf32>, vector<16x16xf32>, vector<16x16xf32> -> vector<16x16xf32>
    %c0_3 = arith.constant 0 : index
    %c0_4 = arith.constant 0 : index
    %3 = vector.load %arg3[%c0_3, %c0_4] : memref<16x16xf32, #tpu.memory_space<vmem>>, vector<16x16xf32>
    tpu.vector_store %arg3[%c0_3, %c0_4], %2 {strides = array<i32>} : memref<16x16xf32, #tpu.memory_space<vmem>>, vector<16x16xf32>,
    return
  }
  func.func @transform_0(%arg0: i32) -> (i32, i32) {
    %c0_i32 = arith.constant 0 : i32
    %c0_i32_0 = arith.constant 0 : i32
    return %arg0, %c0_i32 : i32, i32
  }
  func.func @transform_1(%arg0: i32) -> (i32, i32) {
    %c0_i32 = arith.constant 0 : i32
    %c0_i32_0 = arith.constant 0 : i32
    %c0_i32_1 = arith.constant 0 : i32
    return %c0_i32, %c0_i32_0 : i32, i32
  }
  func.func @transform_2(%arg0: i32) -> (i32, i32) {
    %c0_i32 = arith.constant 0 : i32
    %c0_i32_0 = arith.constant 0 : i32
    return %arg0, %c0_i32 : i32, i32
  }
}

module attributes {stable_mosaic.version = 11 : i64} {
  func.func @cgru_kernel(%arg0: i32, %arg1: memref<2x16xf32, #tpu.memory_space<vmem>>, %arg2: memref<2x128xf32, #tpu.memory_space<vmem>>, %arg3: memref<2x8x16xf32, #tpu.memory_space<vmem>>, %arg4: memref<2x8xf32, #tpu.memory_space<vmem>>, %arg5: memref<2x8x16xf32, #tpu.memory_space<vmem>>, %arg6: memref<16x96xf32, #tpu.memory_space<vmem>>, %arg7: memref<32x96xf32, #tpu.memory_space<vmem>>, %arg8: memref<1x96xf32, #tpu.memory_space<vmem>>, %arg9: memref<1x96xf32, #tpu.memory_space<vmem>>, %arg10: memref<32x16xf32, #tpu.memory_space<vmem>>, %arg11: memref<1x16xf32, #tpu.memory_space<vmem>>, %arg12: memref<1x16xf32, #tpu.memory_space<vmem>>, %arg13: memref<16x96xf32, #tpu.memory_space<vmem>>, %arg14: memref<32x96xf32, #tpu.memory_space<vmem>>, %arg15: memref<1x96xf32, #tpu.memory_space<vmem>>, %arg16: memref<1x96xf32, #tpu.memory_space<vmem>>, %arg17: memref<2x128xf32, #tpu.memory_space<vmem>>) attributes {dimension_semantics = [#tpu.dimension_semantics<parallel>], iteration_bounds = array<i64: 1>, scalar_prefetch = 0 : i64, scratch_operands = 0 : i64, tpu.core_type = #tpu.core_type<tc>, window_params = [{transform_indices = @transform_0, window_bounds = array<i64: 2, 16>}, {transform_indices = @transform_1, window_bounds = array<i64: 2, 128>}, {transform_indices = @transform_2, window_bounds = array<i64: 2, 8, 16>}, {transform_indices = @transform_3, window_bounds = array<i64: 2, 8>}, {transform_indices = @transform_4, window_bounds = array<i64: 2, 8, 16>}, {pipeline_mode = #tpu.pipeline_mode<synchronous>, transform_indices = @transform_5, window_bounds = array<i64: 16, 96>}, {pipeline_mode = #tpu.pipeline_mode<synchronous>, transform_indices = @transform_6, window_bounds = array<i64: 32, 96>}, {pipeline_mode = #tpu.pipeline_mode<synchronous>, transform_indices = @transform_7, window_bounds = array<i64: 1, 96>}, {pipeline_mode = #tpu.pipeline_mode<synchronous>, transform_indices = @transform_8, window_bounds = array<i64: 1, 96>}, {pipeline_mode = #tpu.pipeline_mode<synchronous>, transform_indices = @transform_9, window_bounds = array<i64: 32, 16>}, {pipeline_mode = #tpu.pipeline_mode<synchronous>, transform_indices = @transform_10, window_bounds = array<i64: 1, 16>}, {pipeline_mode = #tpu.pipeline_mode<synchronous>, transform_indices = @transform_11, window_bounds = array<i64: 1, 16>}, {pipeline_mode = #tpu.pipeline_mode<synchronous>, transform_indices = @transform_12, window_bounds = array<i64: 16, 96>}, {pipeline_mode = #tpu.pipeline_mode<synchronous>, transform_indices = @transform_13, window_bounds = array<i64: 32, 96>}, {pipeline_mode = #tpu.pipeline_mode<synchronous>, transform_indices = @transform_14, window_bounds = array<i64: 1, 96>}, {pipeline_mode = #tpu.pipeline_mode<synchronous>, transform_indices = @transform_15, window_bounds = array<i64: 1, 96>}, {transform_indices = @transform_16, window_bounds = array<i64: 2, 128>}]} {
    %c0 = arith.constant 0 : index
    %c0_0 = arith.constant 0 : index
    %0 = vector.load %arg2[%c0, %c0_0] : memref<2x128xf32, #tpu.memory_space<vmem>>, vector<2x128xf32>
    %1 = vector.extract_strided_slice %0 {offsets = [0, 0], sizes = [2, 32], strides = [1, 1]} : vector<2x128xf32> to vector<2x32xf32>
    %c0_1 = arith.constant 0 : index
    %c0_2 = arith.constant 0 : index
    %2 = vector.load %arg1[%c0_1, %c0_2] : memref<2x16xf32, #tpu.memory_space<vmem>>, vector<2x16xf32>
    %c0_3 = arith.constant 0 : index
    %c0_4 = arith.constant 0 : index
    %3 = vector.load %arg6[%c0_3, %c0_4] : memref<16x96xf32, #tpu.memory_space<vmem>>, vector<16x96xf32>
    %c0_5 = arith.constant 0 : index
    %c0_6 = arith.constant 0 : index
    %4 = vector.load %arg7[%c0_5, %c0_6] : memref<32x96xf32, #tpu.memory_space<vmem>>, vector<32x96xf32>
    %cst = arith.constant dense<0.000000e+00> : vector<2x96xf32>
    %5 = tpu.matmul %2, %3, %cst {dimension_numbers = #tpu.dot_dimension_numbers<[1], [0], [0], [1], [0, 0, 1, 1], [], []>} : vector<2x16xf32>, vector<16x96xf32>, vector<2x96xf32> -> vector<2x96xf32>
    %c0_7 = arith.constant 0 : index
    %c0_8 = arith.constant 0 : index
    %6 = vector.load %arg8[%c0_7, %c0_8] : memref<1x96xf32, #tpu.memory_space<vmem>>, vector<1x96xf32>
    %7 = vector.broadcast %6 : vector<1x96xf32> to vector<2x96xf32>
    %8 = arith.addf %5, %7 : vector<2x96xf32>
    %cst_9 = arith.constant dense<0.000000e+00> : vector<2x96xf32>
    %9 = tpu.matmul %1, %4, %cst_9 {dimension_numbers = #tpu.dot_dimension_numbers<[1], [0], [0], [1], [0, 0, 1, 1], [], []>} : vector<2x32xf32>, vector<32x96xf32>, vector<2x96xf32> -> vector<2x96xf32>
    %c0_10 = arith.constant 0 : index
    %c0_11 = arith.constant 0 : index
    %10 = vector.load %arg9[%c0_10, %c0_11] : memref<1x96xf32, #tpu.memory_space<vmem>>, vector<1x96xf32>
    %11 = vector.broadcast %10 : vector<1x96xf32> to vector<2x96xf32>
    %12 = arith.addf %9, %11 : vector<2x96xf32>
    %13 = vector.extract_strided_slice %8 {offsets = [0, 0], sizes = [2, 32], strides = [1, 1]} : vector<2x96xf32> to vector<2x32xf32>
    %14 = vector.extract_strided_slice %12 {offsets = [0, 0], sizes = [2, 32], strides = [1, 1]} : vector<2x96xf32> to vector<2x32xf32>
    %15 = arith.addf %13, %14 : vector<2x32xf32>
    %16 = arith.negf %15 : vector<2x32xf32>
    %17 = math.exp %16 : vector<2x32xf32>
    %cst_12 = arith.constant 1.000000e+00 : f32
    %18 = vector.broadcast %cst_12 : f32 to vector<2x32xf32>
    %19 = arith.addf %18, %17 : vector<2x32xf32>
    %20 = arith.divf %18, %19 : vector<2x32xf32>
    %21 = vector.extract_strided_slice %8 {offsets = [0, 32], sizes = [2, 32], strides = [1, 1]} : vector<2x96xf32> to vector<2x32xf32>
    %22 = vector.extract_strided_slice %12 {offsets = [0, 32], sizes = [2, 32], strides = [1, 1]} : vector<2x96xf32> to vector<2x32xf32>
    %23 = arith.addf %21, %22 : vector<2x32xf32>
    %24 = arith.negf %23 : vector<2x32xf32>
    %25 = math.exp %24 : vector<2x32xf32>
    %cst_13 = arith.constant 1.000000e+00 : f32
    %26 = vector.broadcast %cst_13 : f32 to vector<2x32xf32>
    %27 = arith.addf %26, %25 : vector<2x32xf32>
    %28 = arith.divf %26, %27 : vector<2x32xf32>
    %29 = vector.extract_strided_slice %8 {offsets = [0, 64], sizes = [2, 32], strides = [1, 1]} : vector<2x96xf32> to vector<2x32xf32>
    %30 = vector.extract_strided_slice %12 {offsets = [0, 64], sizes = [2, 32], strides = [1, 1]} : vector<2x96xf32> to vector<2x32xf32>
    %31 = arith.mulf %20, %30 : vector<2x32xf32>
    %32 = arith.addf %29, %31 : vector<2x32xf32>
    %33 = math.tanh %32 : vector<2x32xf32>
    %cst_14 = arith.constant 1.000000e+00 : f32
    %34 = vector.broadcast %cst_14 : f32 to vector<2x32xf32>
    %35 = arith.subf %34, %28 : vector<2x32xf32>
    %36 = arith.mulf %35, %33 : vector<2x32xf32>
    %37 = arith.mulf %28, %1 : vector<2x32xf32>
    %38 = arith.addf %36, %37 : vector<2x32xf32>
    %c0_15 = arith.constant 0 : index
    %c0_16 = arith.constant 0 : index
    %39 = vector.load %arg10[%c0_15, %c0_16] : memref<32x16xf32, #tpu.memory_space<vmem>>, vector<32x16xf32>
    %cst_17 = arith.constant dense<0.000000e+00> : vector<2x16xf32>
    %40 = tpu.matmul %38, %39, %cst_17 {dimension_numbers = #tpu.dot_dimension_numbers<[1], [0], [0], [1], [0, 0, 1, 1], [], []>} : vector<2x32xf32>, vector<32x16xf32>, vector<2x16xf32> -> vector<2x16xf32>
    %c0_18 = arith.constant 0 : index
    %c0_19 = arith.constant 0 : index
    %41 = vector.load %arg11[%c0_18, %c0_19] : memref<1x16xf32, #tpu.memory_space<vmem>>, vector<1x16xf32>
    %42 = vector.broadcast %41 : vector<1x16xf32> to vector<2x16xf32>
    %43 = arith.addf %40, %42 : vector<2x16xf32>
    %c0_20 = arith.constant 0 : index
    %c0_21 = arith.constant 0 : index
    %c0_22 = arith.constant 0 : index
    %44 = vector.load %arg5[%c0_20, %c0_21, %c0_22] : memref<2x8x16xf32, #tpu.memory_space<vmem>>, vector<2x8x16xf32>
    %45 = vector.shape_cast %43 : vector<2x16xf32> to vector<2x1x16xf32>
    %46 = vector.broadcast %45 : vector<2x1x16xf32> to vector<2x8x16xf32>
    %47 = arith.addf %46, %44 : vector<2x8x16xf32>
    %48 = math.tanh %47 : vector<2x8x16xf32>
    %c0_23 = arith.constant 0 : index
    %c0_24 = arith.constant 0 : index
    %49 = vector.load %arg12[%c0_23, %c0_24] : memref<1x16xf32, #tpu.memory_space<vmem>>, vector<1x16xf32>
    %50 = vector.shape_cast %49 : vector<1x16xf32> to vector<1x1x16xf32>
    %51 = vector.broadcast %50 : vector<1x1x16xf32> to vector<2x8x16xf32>
    %52 = arith.mulf %48, %51 : vector<2x8x16xf32>
    %cst_25 = arith.constant dense<0.000000e+00> : vector<2x8xf32>
    %53 = vector.multi_reduction <add>, %52, %cst_25 [2] : vector<2x8x16xf32> to vector<2x8xf32>
    %c0_26 = arith.constant 0 : index
    %c0_27 = arith.constant 0 : index
    %54 = vector.load %arg4[%c0_26, %c0_27] : memref<2x8xf32, #tpu.memory_space<vmem>>, vector<2x8xf32>
    %cst_28 = arith.constant 5.000000e-01 : f32
    %55 = vector.broadcast %cst_28 : f32 to vector<2x8xf32>
    %56 = arith.cmpf ogt, %54, %55 : vector<2x8xf32>
    %cst_29 = arith.constant -1.000000e+09 : f32
    %57 = vector.broadcast %cst_29 : f32 to vector<2x8xf32>
    %58 = arith.select %56, %57, %53 : vector<2x8xi1>, vector<2x8xf32>
    %cst_30 = arith.constant dense<0xFF800000> : vector<2xf32>
    %59 = vector.multi_reduction <maximumf>, %58, %cst_30 [1] : vector<2x8xf32> to vector<2xf32>
    %60 = vector.shape_cast %59 : vector<2xf32> to vector<2x1xf32>
    %61 = vector.broadcast %60 : vector<2x1xf32> to vector<2x8xf32>
    %62 = arith.subf %58, %61 : vector<2x8xf32>
    %63 = math.exp %62 : vector<2x8xf32>
    %cst_31 = arith.constant dense<0.000000e+00> : vector<2xf32>
    %64 = vector.multi_reduction <add>, %63, %cst_31 [1] : vector<2x8xf32> to vector<2xf32>
    %65 = vector.shape_cast %64 : vector<2xf32> to vector<2x1xf32>
    %66 = tpu.reciprocal %65 : vector<2x1xf32> -> vector<2x1xf32>
    %67 = vector.broadcast %66 : vector<2x1xf32> to vector<2x8xf32>
    %68 = arith.mulf %63, %67 : vector<2x8xf32>
    %c0_32 = arith.constant 0 : index
    %c0_33 = arith.constant 0 : index
    %c0_34 = arith.constant 0 : index
    %69 = vector.load %arg3[%c0_32, %c0_33, %c0_34] : memref<2x8x16xf32, #tpu.memory_space<vmem>>, vector<2x8x16xf32>
    %70 = vector.shape_cast %68 : vector<2x8xf32> to vector<2x8x1xf32>
    %71 = vector.broadcast %70 : vector<2x8x1xf32> to vector<2x8x16xf32>
    %72 = arith.mulf %71, %69 : vector<2x8x16xf32>
    %cst_35 = arith.constant dense<0.000000e+00> : vector<2x16xf32>
    %73 = vector.multi_reduction <add>, %72, %cst_35 [1] : vector<2x8x16xf32> to vector<2x16xf32>
    %c0_36 = arith.constant 0 : index
    %c0_37 = arith.constant 0 : index
    %74 = vector.load %arg13[%c0_36, %c0_37] : memref<16x96xf32, #tpu.memory_space<vmem>>, vector<16x96xf32>
    %c0_38 = arith.constant 0 : index
    %c0_39 = arith.constant 0 : index
    %75 = vector.load %arg14[%c0_38, %c0_39] : memref<32x96xf32, #tpu.memory_space<vmem>>, vector<32x96xf32>
    %cst_40 = arith.constant dense<0.000000e+00> : vector<2x96xf32>
    %76 = tpu.matmul %73, %74, %cst_40 {dimension_numbers = #tpu.dot_dimension_numbers<[1], [0], [0], [1], [0, 0, 1, 1], [], []>} : vector<2x16xf32>, vector<16x96xf32>, vector<2x96xf32> -> vector<2x96xf32>
    %c0_41 = arith.constant 0 : index
    %c0_42 = arith.constant 0 : index
    %77 = vector.load %arg15[%c0_41, %c0_42] : memref<1x96xf32, #tpu.memory_space<vmem>>, vector<1x96xf32>
    %78 = vector.broadcast %77 : vector<1x96xf32> to vector<2x96xf32>
    %79 = arith.addf %76, %78 : vector<2x96xf32>
    %cst_43 = arith.constant dense<0.000000e+00> : vector<2x96xf32>
    %80 = tpu.matmul %38, %75, %cst_43 {dimension_numbers = #tpu.dot_dimension_numbers<[1], [0], [0], [1], [0, 0, 1, 1], [], []>} : vector<2x32xf32>, vector<32x96xf32>, vector<2x96xf32> -> vector<2x96xf32>
    %c0_44 = arith.constant 0 : index
    %c0_45 = arith.constant 0 : index
    %81 = vector.load %arg16[%c0_44, %c0_45] : memref<1x96xf32, #tpu.memory_space<vmem>>, vector<1x96xf32>
    %82 = vector.broadcast %81 : vector<1x96xf32> to vector<2x96xf32>
    %83 = arith.addf %80, %82 : vector<2x96xf32>
    %84 = vector.extract_strided_slice %79 {offsets = [0, 0], sizes = [2, 32], strides = [1, 1]} : vector<2x96xf32> to vector<2x32xf32>
    %85 = vector.extract_strided_slice %83 {offsets = [0, 0], sizes = [2, 32], strides = [1, 1]} : vector<2x96xf32> to vector<2x32xf32>
    %86 = arith.addf %84, %85 : vector<2x32xf32>
    %87 = arith.negf %86 : vector<2x32xf32>
    %88 = math.exp %87 : vector<2x32xf32>
    %cst_46 = arith.constant 1.000000e+00 : f32
    %89 = vector.broadcast %cst_46 : f32 to vector<2x32xf32>
    %90 = arith.addf %89, %88 : vector<2x32xf32>
    %91 = arith.divf %89, %90 : vector<2x32xf32>
    %92 = vector.extract_strided_slice %79 {offsets = [0, 32], sizes = [2, 32], strides = [1, 1]} : vector<2x96xf32> to vector<2x32xf32>
    %93 = vector.extract_strided_slice %83 {offsets = [0, 32], sizes = [2, 32], strides = [1, 1]} : vector<2x96xf32> to vector<2x32xf32>
    %94 = arith.addf %92, %93 : vector<2x32xf32>
    %95 = arith.negf %94 : vector<2x32xf32>
    %96 = math.exp %95 : vector<2x32xf32>
    %cst_47 = arith.constant 1.000000e+00 : f32
    %97 = vector.broadcast %cst_47 : f32 to vector<2x32xf32>
    %98 = arith.addf %97, %96 : vector<2x32xf32>
    %99 = arith.divf %97, %98 : vector<2x32xf32>
    %100 = vector.extract_strided_slice %79 {offsets = [0, 64], sizes = [2, 32], strides = [1, 1]} : vector<2x96xf32> to vector<2x32xf32>
    %101 = vector.extract_strided_slice %83 {offsets = [0, 64], sizes = [2, 32], strides = [1, 1]} : vector<2x96xf32> to vector<2x32xf32>
    %102 = arith.mulf %91, %101 : vector<2x32xf32>
    %103 = arith.addf %100, %102 : vector<2x32xf32>
    %104 = math.tanh %103 : vector<2x32xf32>
    %cst_48 = arith.constant 1.000000e+00 : f32
    %105 = vector.broadcast %cst_48 : f32 to vector<2x32xf32>
    %106 = arith.subf %105, %99 : vector<2x32xf32>
    %107 = arith.mulf %106, %104 : vector<2x32xf32>
    %108 = arith.mulf %99, %38 : vector<2x32xf32>
    %109 = arith.addf %107, %108 : vector<2x32xf32>
    %cst_49 = arith.constant 0.000000e+00 : f32
    %110 = vector.broadcast %cst_49 : f32 to vector<2x80xf32>
    %111 = tpu.concatenate %109, %73, %110 in 1 : vector<2x32xf32>, vector<2x16xf32>, vector<2x80xf32> -> vector<2x128xf32>
    %c0_50 = arith.constant 0 : index
    %c0_51 = arith.constant 0 : index
    %112 = vector.load %arg17[%c0_50, %c0_51] : memref<2x128xf32, #tpu.memory_space<vmem>>, vector<2x128xf32>
    tpu.vector_store %arg17[%c0_50, %c0_51], %111 {strides = array<i32>} : memref<2x128xf32, #tpu.memory_space<vmem>>, vector<2x128xf32>,
    return
  }
  func.func @transform_0(%arg0: i32) -> (i32, i32) {
    %c0_i32 = arith.constant 0 : i32
    %c0_i32_0 = arith.constant 0 : i32
    return %arg0, %c0_i32 : i32, i32
  }
  func.func @transform_1(%arg0: i32) -> (i32, i32) {
    %c0_i32 = arith.constant 0 : i32
    %c0_i32_0 = arith.constant 0 : i32
    return %arg0, %c0_i32 : i32, i32
  }
  func.func @transform_2(%arg0: i32) -> (i32, i32, i32) {
    %c0_i32 = arith.constant 0 : i32
    %c0_i32_0 = arith.constant 0 : i32
    %c0_i32_1 = arith.constant 0 : i32
    return %arg0, %c0_i32, %c0_i32_0 : i32, i32, i32
  }
  func.func @transform_3(%arg0: i32) -> (i32, i32) {
    %c0_i32 = arith.constant 0 : i32
    %c0_i32_0 = arith.constant 0 : i32
    return %arg0, %c0_i32 : i32, i32
  }
  func.func @transform_4(%arg0: i32) -> (i32, i32, i32) {
    %c0_i32 = arith.constant 0 : i32
    %c0_i32_0 = arith.constant 0 : i32
    %c0_i32_1 = arith.constant 0 : i32
    return %arg0, %c0_i32, %c0_i32_0 : i32, i32, i32
  }
  func.func @transform_5(%arg0: i32) -> (i32, i32) {
    %c0_i32 = arith.constant 0 : i32
    %c0_i32_0 = arith.constant 0 : i32
    %c0_i32_1 = arith.constant 0 : i32
    return %c0_i32, %c0_i32_0 : i32, i32
  }
  func.func @transform_6(%arg0: i32) -> (i32, i32) {
    %c0_i32 = arith.constant 0 : i32
    %c0_i32_0 = arith.constant 0 : i32
    %c0_i32_1 = arith.constant 0 : i32
    return %c0_i32, %c0_i32_0 : i32, i32
  }
  func.func @transform_7(%arg0: i32) -> (i32, i32) {
    %c0_i32 = arith.constant 0 : i32
    %c0_i32_0 = arith.constant 0 : i32
    %c0_i32_1 = arith.constant 0 : i32
    return %c0_i32, %c0_i32_0 : i32, i32
  }
  func.func @transform_8(%arg0: i32) -> (i32, i32) {
    %c0_i32 = arith.constant 0 : i32
    %c0_i32_0 = arith.constant 0 : i32
    %c0_i32_1 = arith.constant 0 : i32
    return %c0_i32, %c0_i32_0 : i32, i32
  }
  func.func @transform_9(%arg0: i32) -> (i32, i32) {
    %c0_i32 = arith.constant 0 : i32
    %c0_i32_0 = arith.constant 0 : i32
    %c0_i32_1 = arith.constant 0 : i32
    return %c0_i32, %c0_i32_0 : i32, i32
  }
  func.func @transform_10(%arg0: i32) -> (i32, i32) {
    %c0_i32 = arith.constant 0 : i32
    %c0_i32_0 = arith.constant 0 : i32
    %c0_i32_1 = arith.constant 0 : i32
    return %c0_i32, %c0_i32_0 : i32, i32
  }
  func.func @transform_11(%arg0: i32) -> (i32, i32) {
    %c0_i32 = arith.constant 0 : i32
    %c0_i32_0 = arith.constant 0 : i32
    %c0_i32_1 = arith.constant 0 : i32
    return %c0_i32, %c0_i32_0 : i32, i32
  }
  func.func @transform_12(%arg0: i32) -> (i32, i32) {
    %c0_i32 = arith.constant 0 : i32
    %c0_i32_0 = arith.constant 0 : i32
    %c0_i32_1 = arith.constant 0 : i32
    return %c0_i32, %c0_i32_0 : i32, i32
  }
  func.func @transform_13(%arg0: i32) -> (i32, i32) {
    %c0_i32 = arith.constant 0 : i32
    %c0_i32_0 = arith.constant 0 : i32
    %c0_i32_1 = arith.constant 0 : i32
    return %c0_i32, %c0_i32_0 : i32, i32
  }
  func.func @transform_14(%arg0: i32) -> (i32, i32) {
    %c0_i32 = arith.constant 0 : i32
    %c0_i32_0 = arith.constant 0 : i32
    %c0_i32_1 = arith.constant 0 : i32
    return %c0_i32, %c0_i32_0 : i32, i32
  }
  func.func @transform_15(%arg0: i32) -> (i32, i32) {
    %c0_i32 = arith.constant 0 : i32
    %c0_i32_0 = arith.constant 0 : i32
    %c0_i32_1 = arith.constant 0 : i32
    return %c0_i32, %c0_i32_0 : i32, i32
  }
  func.func @transform_16(%arg0: i32) -> (i32, i32) {
    %c0_i32 = arith.constant 0 : i32
    %c0_i32_0 = arith.constant 0 : i32
    return %arg0, %c0_i32 : i32, i32
  }
}

</mosaic_0001>

<bundles_post_ra>
// kernel: cgru_cell_pallas.2
= control target key start
LH: loop header
LB: loop body
LE: loop exit
PB: predicated region body
PF: predicated region fallthrough
CT: control target
= control target key end

     0   :  { %vm15_vm0 = vcmask 130048   ;;  %s149_s1 = inlined_call_operand.vmem [shape: f32[16,16], index: 1, kind: input, shape index: {}]   ;;  %s150_s0 = inlined_call_operand.vmem [shape: f32[16,16], index: 0, kind: input, shape index: {}]   ;;  %s151_s2 = inlined_call_operand.vmem [shape: f32[16,16], index: 2, kind: output, shape index: {}]  }
   0x1   :  { %v14_v0 = vld [vmem:[%s149_s1 + $0x8] sm:$0xff]  ;;  %v13_v1 = vld [vmem:[%s149_s1] sm:$0xff] }
   0x2   :  { %v11_v2 = vld [vmem:[%s150_s0] sm:$0xff]  ;;  %109 = vmatprep.subr.mxu0 %v14_v0  ;;  %v12_v3 = vld [vmem:[%s150_s0 + $0x8] sm:$0xff] }
   0x3   :  { %113 = vmatprep.mubr.msk.f32.mxu0 %vm15_vm0, %v11_v2  ;;  %110 = vmatpush3.msra.mxu0 %v14_v0 }
   0x4   :  { %111 = vmatprep.subr.mxu0 %v13_v1 }
   0x5   :  { %112 = vmatpush3.msra.mxu0 %v13_v1 }
   0x6   :  { %114 = vmatmul.mubr.msk.f32.vlgmr.msra.gmra.mxu0 %vm15_vm0, %v12_v3 }
  0xc6   :  { %v115_v4 = vpop.f32.mrf.mxu0 }
  0xc7   :  { %98 = vst.msk [vmem:[%s151_s2 + $0x8] sm:$0xff] %vm15_vm0, %v115_v4 }
  0xc8   :  { %v88_v5 = vpop.f32.mrf.mxu0 }
  0xc9   :  { %97 = vst.msk [vmem:[%s151_s2] sm:$0xff] %vm15_vm0, %v88_v5 }

// kernel: cgru_cell_pallas.3
= control target key start
LH: loop header
LB: loop body
LE: loop exit
PB: predicated region body
PF: predicated region fallthrough
CT: control target
= control target key end

     0   :  { %s1287_s0 = inlined_call_operand.vmem [shape: f32[2,16], index: 0, kind: input, shape index: {}]   ;;  %s1288_s1 = inlined_call_operand.vmem [shape: f32[2,128], index: 1, kind: input, shape index: {}, may-alias: {1,16}]   ;;  %s1289_s2 = inlined_call_operand.vmem [shape: f32[2,8,16], index: 2, kind: input, shape index: {}]   ;;  %s1290_s3 = inlined_call_operand.hbm [shape: f32[2,8], index: 3, kind: input, shape index: {}]   ;;  %s1291_s4 = inlined_call_operand.vmem [shape: f32[2,8,16], index: 4, kind: input, shape index: {}]   ;;  %s1292_s5 = inlined_call_operand.vmem [shape: f32[16,96], index: 5, kind: input, shape index: {}]   ;;  %s1293_s6 = inlined_call_operand.vmem [shape: f32[32,96], index: 6, kind: input, shape index: {}]   ;;  %s1294_s7 = inlined_call_operand.hbm [shape: f32[1,96], index: 7, kind: input, shape index: {}]   ;;  %s1295_s8 = inlined_call_operand.hbm [shape: f32[1,96], index: 8, kind: input, shape index: {}]   ;;  %s1296_s9 = inlined_call_operand.vmem [shape: f32[32,16], index: 9, kind: input, shape index: {}]   ;;  %s1297_s10 = inlined_call_operand.hbm [shape: f32[1,16], index: 10, kind: input, shape index: {}]   ;;  %s1298_s11 = inlined_call_operand.hbm [shape: f32[1,16], index: 11, kind: input, shape index: {}]   ;;  %s1299_s12 = inlined_call_operand.hbm [shape: f32[16,96], index: 12, kind: input, shape index: {}]   ;;  %s1300_s13 = inlined_call_operand.vmem [shape: f32[32,96], index: 13, kind: input, shape index: {}]   ;;  %s1301_s14 = inlined_call_operand.hbm [shape: f32[1,96], index: 14, kind: input, shape index: {}]   ;;  %s1302_s15 = inlined_call_operand.hbm [shape: f32[1,96], index: 15, kind: input, shape index: {}]   ;;  %s1303_s16 = inlined_call_operand.vmem [shape: f32[2,128], index: 16, kind: output, shape index: {}, may-alias: {1,16}]  }
   0x1   :  { %1304 = sst [smem:[#allocation20_spill]] %s1287_s0 }
   0x2   :  { %21 = vsyncpa [#allocation3], 0 }
   0x3   :  { %22 = vsyncpa [#allocation5], 0 }
   0x4   :  { %23 = vsyncpa [#allocation8], 0 }
   0x5   :  { %24 = vsyncpa [#allocation11], 0 }
   0x6   :  { %25 = vsyncpa [#allocation14], 0  ;;  %s1047_s21 = smov [#allocation4]   ;;  %s1048_s23 = smov [#allocation7]  }
   0x7   :  { %s54_s22 = sshll.u32 %s1047_s21, 4  ;;  %s76_s24 = sshll.u32 %s1048_s23, 4  ;;  %s55_s22 = int_to_ptr.vmem [resolvable:$true] %s54_s22  ;;  %s77_s24 = int_to_ptr.vmem [resolvable:$true] %s76_s24 }
   0x8   :  { %s885_s25 = scalar_lea.vmem %s55_s22, 16  ;;  %s889_s26 = scalar_lea.vmem %s55_s22, 32 }
   0x9   :  { %p886_p0 = scmp.ne.s32.totalorder %s55_s22, %s885_s25  ;;  %p890_p1 = scmp.lt.s32.totalorder %s55_s22, %s55_s22 }
   0xa   :  { %p891_p2 = scmp.lt.s32.totalorder %s889_s26, %s885_s25 }
   0xc   :  { %p892_p3 = por %p891_p2, %p890_p1 }
   0xe   :  { %p893_p4 = pnand %p892_p3, %p886_p0 }
  0x10   :  { %896 = shalt.err (!%p893_p4)
}
  0x11   :  { %57 = dma.hbm_to_vmem [thread:$0]  %s1294_s7, 16, %s55_s22, [#allocation5]  }
  0x12   :  { %s905_s29 = scalar_lea.vmem %s77_s24, 16  ;;  %s909_s30 = scalar_lea.vmem %s77_s24, 32 }
  0x13   :  { %p906_p5 = scmp.ne.s32.totalorder %s77_s24, %s905_s29  ;;  %p910_p6 = scmp.lt.s32.totalorder %s77_s24, %s77_s24 }
  0x14   :  { %p911_p7 = scmp.lt.s32.totalorder %s909_s30, %s905_s29 }
  0x16   :  { %p912_p8 = por %p911_p7, %p910_p6 }
  0x18   :  { %p913_p9 = pnand %p912_p8, %p906_p5 }
  0x1a   :  { %916 = shalt.err (!%p913_p9)
}
  0x1b   :  { %79 = dma.hbm_to_vmem [thread:$0]  %s1297_s10, 16, %s77_s24, [#allocation8]  }
  0x1c   :  { %s1049_s18 = smov [#allocation10]  }
  0x1d   :  { %s95_s19 = sshll.u32 %s1049_s18, 4  ;;  %s96_s19 = int_to_ptr.vmem [resolvable:$true] %s95_s19 }
  0x1e   :  { %s925_s20 = scalar_lea.vmem %s96_s19, 256  ;;  %p930_p11 = scmp.lt.s32.totalorder %s96_s19, %s96_s19 }
  0x1f   :  { %p926_p10 = scmp.ne.s32.totalorder %s96_s19, %s925_s20  ;;  %p931_p12 = scmp.lt.s32.totalorder %s925_s20, %s925_s20 }
  0x21   :  { %p932_p13 = por %p931_p12, %p930_p11 }
  0x23   :  { %p933_p0 = pnand %p932_p13, %p926_p10 }
  0x25   :  { %936 = shalt.err (!%p933_p0)
}
  0x26   :  { %s1050_s7 = smov 128   ;;  %s1051_s21 = smov 8  }
  0x27   :  { %101 = dma.hbm_to_vmem [thread:$0]  %s1299_s12, 256, %s96_s19, [#allocation11], %s1050_s7, %s1050_s7, %s1051_s21  }
  0x28   :  { %s1052_s25 = smov [#allocation2]   ;;  %s1053_s10 = smov [#allocation6]  }
  0x29   :  { %s38_s26 = sshll.u32 %s1052_s25, 4  ;;  %s64_s24 = sshll.u32 %s1053_s10, 4  ;;  %s39_s26 = int_to_ptr.vmem [resolvable:$true] %s38_s26  ;;  %s65_s24 = int_to_ptr.vmem [resolvable:$true] %s64_s24 }
  0x2a   :  { %s945_s27 = scalar_lea.vmem %s39_s26, 32  ;;  %p950_p2 = scmp.lt.s32.totalorder %s39_s26, %s39_s26 }
  0x2b   :  { %p946_p1 = scmp.ne.s32.totalorder %s39_s26, %s945_s27  ;;  %p951_p3 = scmp.lt.s32.totalorder %s945_s27, %s945_s27 }
  0x2d   :  { %p952_p4 = por %p951_p3, %p950_p2 }
  0x2f   :  { %p953_p5 = pnand %p952_p4, %p946_p1 }
  0x31   :  { %956 = shalt.err (!%p953_p5)
}
  0x32   :  { %41 = dma.hbm_to_vmem [thread:$0]  %s1290_s3, 32, %s39_s26, [#allocation3]  }
  0x33   :  { %s965_s30 = scalar_lea.vmem %s65_s24, 16  ;;  %s969_s12 = scalar_lea.vmem %s65_s24, 32 }
  0x34   :  { %p966_p6 = scmp.ne.s32.totalorder %s65_s24, %s965_s30  ;;  %p970_p7 = scmp.lt.s32.totalorder %s65_s24, %s65_s24 }
  0x35   :  { %p971_p8 = scmp.lt.s32.totalorder %s969_s12, %s965_s30 }
  0x37   :  { %p972_p9 = por %p971_p8, %p970_p7 }
  0x39   :  { %p973_p10 = pnand %p972_p9, %p966_p6 }
  0x3b   :  { %976 = shalt.err (!%p973_p10)
}
  0x3c   :  { %67 = dma.hbm_to_vmem [thread:$0]  %s1295_s8, 16, %s65_s24, [#allocation5]  }
  0x3d   :  { %s1054_s18 = smov [#allocation9]   ;;  %s1055_s20 = smov [#allocation12]  }
  0x3e   :  { %s86_s19 = sshll.u32 %s1054_s18, 4  ;;  %s110_s7 = sshll.u32 %s1055_s20, 4  ;;  %s87_s19 = int_to_ptr.vmem [resolvable:$true] %s86_s19  ;;  %s111_s7 = int_to_ptr.vmem [resolvable:$true] %s110_s7 }
  0x3f   :  { %s985_s21 = scalar_lea.vmem %s87_s19, 16  ;;  %s989_s3 = scalar_lea.vmem %s87_s19, 32 }
  0x40   :  { %p986_p11 = scmp.ne.s32.totalorder %s87_s19, %s985_s21  ;;  %p990_p12 = scmp.lt.s32.totalorder %s87_s19, %s87_s19 }
  0x41   :  { %p991_p13 = scmp.lt.s32.totalorder %s989_s3, %s985_s21 }
  0x43   :  { %p992_p0 = por %p991_p13, %p990_p12 }
  0x45   :  { %p993_p1 = pnand %p992_p0, %p986_p11 }
  0x47   :  { %996 = shalt.err (!%p993_p1)
}
  0x48   :  { %89 = dma.hbm_to_vmem [thread:$0]  %s1298_s11, 16, %s87_s19, [#allocation8]  }
  0x49   :  { %s1005_s25 = scalar_lea.vmem %s111_s7, 16  ;;  %s1009_s8 = scalar_lea.vmem %s111_s7, 32 }
  0x4a   :  { %p1006_p2 = scmp.ne.s32.totalorder %s111_s7, %s1005_s25  ;;  %p1010_p3 = scmp.lt.s32.totalorder %s111_s7, %s111_s7 }
  0x4b   :  { %p1011_p4 = scmp.lt.s32.totalorder %s1009_s8, %s1005_s25 }
  0x4d   :  { %p1012_p5 = por %p1011_p4, %p1010_p3 }
  0x4f   :  { %p1013_p6 = pnand %p1012_p5, %p1006_p2 }
  0x51   :  { %1016 = shalt.err (!%p1013_p6)
}
  0x52   :  { %113 = dma.hbm_to_vmem [thread:$0]  %s1301_s14, 16, %s111_s7, [#allocation11]  }
  0x53   :  { %s1056_s24 = smov [#allocation13]  }
  0x54   :  { %s120_s27 = sshll.u32 %s1056_s24, 4  ;;  %s121_s27 = int_to_ptr.vmem [resolvable:$true] %s120_s27 }
  0x55   :  { %s1025_s28 = scalar_lea.vmem %s121_s27, 16  ;;  %s1029_s29 = scalar_lea.vmem %s121_s27, 32 }
  0x56   :  { %p1026_p7 = scmp.ne.s32.totalorder %s121_s27, %s1025_s28  ;;  %p1030_p8 = scmp.lt.s32.totalorder %s121_s27, %s121_s27 }
  0x57   :  { %p1031_p9 = scmp.lt.s32.totalorder %s1029_s29, %s1025_s28 }
  0x59   :  { %p1032_p10 = por %p1031_p9, %p1030_p8 }
  0x5b   :  { %p1033_p11 = pnand %p1032_p10, %p1026_p7 }
  0x5d   :  { %1036 = shalt.err (!%p1033_p11)
}
  0x5e   :  { %123 = dma.hbm_to_vmem [thread:$0]  %s1302_s15, 16, %s121_s27, [#allocation14]  }
  0x5f   :  { %1037 = dma.done.wait [#allocation3], 32  }
  0x60   :  { %1038 = vsyncadd [#allocation3], 4294967264 }
  0x61   :  { %1039 = dma.done.wait [#allocation5], 32  }
  0x62   :  { %1040 = vsyncadd [#allocation5], 4294967264 }
  0x63   :  { %1041 = dma.done.wait [#allocation8], 32  }
  0x64   :  { %1042 = vsyncadd [#allocation8], 4294967264 }
  0x65   :  { %1043 = dma.done.wait [#allocation11], 272  }
  0x66   :  { %1044 = vsyncadd [#allocation11], 4294967024 }
  0x67   :  { %1045 = dma.done.wait [#allocation14], 16  }
  0x68   :  { %1046 = vsyncadd [#allocation14], 4294967280  ;;  %v1057_v0 = vmov 0.0   ;;  %vm1058_vm0 = vmmov 0   ;;  %v151_v1 = vld [vmem:[%s1292_s5 + $0x8] sm:$0xff]  ;;  %v150_v2 = vld [vmem:[%s1292_s5] sm:$0xff]  ;;  %v439_v44 = vlaneseq }
  0x69   :  { %794 = vmatprep.subr.mxu1 %v1057_v0  ;;  %798 = vmatprep.mubr.msk.f32.mxu1 %vm1058_vm0, %v1057_v0  ;;  %s1305_s19 = sld [smem:[#allocation20_spill]]  ;;  %vm163_vm1 = vcmask 130048   ;;  %v155_v4 = vld [vmem:[%s1293_s6 + $0x18] sm:$0xff]  ;;  %v154_v5 = vld [vmem:[%s1293_s6 + $0x10] sm:$0xff]  ;;  %v153_v6 = vld [vmem:[%s1293_s6 + $0x8] sm:$0xff]  ;;  %vm244_vm2 = vcmask 261120  }
  0x6a   :  { %812 = vmatprep.subr.mxu0 %v1057_v0  ;;  %820 = vmatprep.mubr.msk.f32.mxu0 %vm1058_vm0, %v1057_v0  ;;  %v152_v7 = vld [vmem:[%s1293_s6] sm:$0xff]  ;;  %s1059_s6 = smov 64   ;;  %v350_v26 = vld [vmem:[%s1296_s9 + $0x18] sm:$0xff]  ;;  %v349_v27 = vld [vmem:[%s1296_s9 + $0x10] sm:$0xff]  ;;  %s1060_s14 = smov 96   ;;  %v440_v46 = vshrl.u32 %v439_v44, 7 }
  0x6b   :  { %795 = vmatpush3.msra.mxu1 %v151_v1  ;;  %v148_v8 = vld [vmem:[%s1288_s1] sm:$0x3]  ;;  %v762_v11 = vld [vmem:[#allocation6] ss:$0 sm:$0xff]  ;;  %v760_v15 = vld [vmem:[#allocation4] ss:$0 sm:$0xff]  ;;  %813 = vmatpush3.msra.mxu0 %v350_v26 }
  0x6c   :  { %796 = vmatprep.subr.mxu1 %v1057_v0  ;;  %814 = vmatprep.subr.mxu0 %v1057_v0  ;;  %v348_v28 = vld [vmem:[%s1296_s9 + $0x8] sm:$0xff]  ;;  %v347_v30 = vld [vmem:[%s1296_s9] sm:$0xff]  ;;  %s1061_s15 = smov 32   ;;  %v554_v37 = vld [vmem:[%s1300_s13 + $0x18] sm:$0xff]  ;;  %v1062_v42 = vmov 1966171168  }
  0x6d   :  { %797 = vmatpush3.msra.mxu1 %v150_v2  ;;  %815 = vmatpush3.msra.mxu0 %v349_v27  ;;  %v553_v39 = vld [vmem:[%s1300_s13 + $0x10] sm:$0xff]  ;;  %v552_v40 = vld [vmem:[%s1300_s13 + $0x8] sm:$0xff]  ;;  %v551_v41 = vld [vmem:[%s1300_s13] sm:$0xff]  ;;  %v437_v43 = vunpack.c.l.s4 %v1062_v42  ;;  %v460_v53 = vsub.s32 0, %v440_v46  ;;  %vm501_vm3 = vcmask 1041409   ;;  %vm505_vm5 = vcmask 58368  }
  0x6e   :  { %801 = vmatprep.subr.mxu1 %v1057_v0  ;;  %816 = vmatprep.subr.mxu0 %v1057_v0  ;;  %v765_v47 = vld [vmem:[#allocation7] ss:$0 sm:$0xff]  ;;  %v434_v59 = vld [vmem:[%s1291_s4 + $0x8] sm:$0xff]  ;;  %vm748_vm6 = vcmask 392192  }
  0x6f   :  { %v149_v3 = vld [vmem:[%s1305_s19] sm:$0x3]  ;;  %817 = vmatpush3.msra.mxu0 %v348_v28  ;;  %v438_v45 = vunpack.c.0.s8 %v437_v43  ;;  %v767_v2 = vld [vmem:[#allocation9] ss:$0 sm:$0xff] }
  0x70   :  { %799 = vmatmul.mubr.msk.f32.vlgmr.msra.gmra.mxu1 %vm163_vm1, %v149_v3  ;;  %818 = vmatprep.subr.mxu0 %v1057_v0  ;;  %v433_v56 = vld [vmem:[%s1291_s4] sm:$0xff] }
  0x71   :  { %802 = vmatpush3.msra.mxu1 %v155_v4  ;;  %809 = vmatprep.mubr.msk.f32.mxu1 %vm1058_vm0, %v1057_v0  ;;  %v441_v48 = vsub.s32 %v438_v45, %v440_v46 }
  0x72   :  { %803 = vmatprep.subr.mxu1 %v1057_v0  ;;  %819 = vmatpush3.msra.mxu0 %v347_v30  ;;  %v770_v30 = vld [vmem:[#allocation13] ss:$0 sm:$0xff] }
  0x73   :  { %804 = vmatpush3.msra.mxu1 %v154_v5  ;;  %830 = vmatprep.subr.mxu0 %v1057_v0 }
  0x74   :  { %805 = vmatprep.subr.mxu1 %v1057_v0 }
  0x75   :  { %806 = vmatpush3.msra.mxu1 %v153_v6 }
  0x76   :  { %807 = vmatprep.subr.mxu1 %v1057_v0 }
  0x77   :  { %808 = vmatpush3.msra.mxu1 %v152_v7 }
  0x78   :  { %810 = vmatmul.mubr.msk.f32.vlgmr.msra.gmra.mxu1 %vm244_vm2, %v148_v8  ;;  %823 = vmatprep.subr.mxu1 %v1057_v0 }
  0x79   :  { %827 = vmatprep.mubr.msk.f32.mxu1 %vm1058_vm0, %v1057_v0 }
 0x130   :  { %v233_v9 = vpop.f32.mrf.mxu1 }
 0x131   :  { %v234_v16 = vadd.f32 %v760_v15, %v233_v9  ;;  %v492_v9 = vand.u32 127, %v439_v44 }
 0x132   :  { %v800_v10 = vpop.f32.mrf.mxu1 }
 0x133   :  { %v495_v10 = vsub.s32 %v492_v9, %v440_v46 }
 0x138   :  { %v314_v12 = vpop.f32.mrf.mxu1 }
 0x139   :  { %v315_v13 = vadd.f32 %v762_v11, %v314_v12  ;;  %v487_v12 = vld [vmem:[#allocation2] sm:$0x3] }
 0x13a   :  { %v811_v14 = vpop.f32.mrf.mxu1  ;;  %vm488_vm4 = vcmp.gt.f32.partialorder %v487_v12, 0.5 }
 0x13b   :  { %326 = vrot.lane.b32.xlu0 %v315_v13, %s1059_s6  ;;  %v318_v17 = vadd.f32 %v315_v13, %v234_v16 }
 0x13d   :  { %v764_v18 = vmul.f32 -1.442695, %v318_v17 }
 0x13f   :  { %857 = vpow2.f32 %v764_v18 }
 0x14c   :  { %v858_v19 = vpop.eup %857 }
 0x14d   :  { %v322_v20 = vadd.f32 1.0, %v858_v19 }
 0x14f   :  { %859 = vrcp.f32 %v322_v20 }
 0x15c   :  { %v860_v21 = vpop.eup %859 }
 0x15d   :  { %v336_v32 = vsub.f32 1.0, %v860_v21 }
 0x1ad   :  { %v327_v22 = vpop.permute.xlu0 %326 }
 0x1ae   :  { %v329_v23 = vmul.f32 %v860_v21, %v327_v22 }
 0x1b0   :  { %331 = vrot.lane.b32.xlu0 %v329_v23, %s1059_s6 }
 0x222   :  { %v332_v24 = vpop.permute.xlu0 %331 }
 0x223   :  { %v334_v25 = vadd.f32 %v332_v24, %v234_v16 }
 0x225   :  { %861 = vtanh.f32 %v334_v25  ;;  %v528_v25 = vsub.s32 1, %v440_v46 }
 0x232   :  { %v862_v29 = vpop.eup %861 }
 0x233   :  { %338 = vrot.lane.b32.xlu1 %v862_v29, %s1060_s14 }
 0x237   :  { %342 = vrot.lane.b32.xlu1 %v148_v8, %s1061_s15 }
 0x2a5   :  { %v339_v31 = vpop.permute.xlu1 %338 }
 0x2a6   :  { %v341_v34 = vmul.f32 %v339_v31, %v336_v32  ;;  %v550_v31 = vld [vmem:[#allocation10 + $0x8] sm:$0xff]  ;;  %v549_v32 = vld [vmem:[#allocation10] sm:$0xff] }
 0x2a7   :  { %824 = vmatpush3.msra.mxu1 %v550_v31 }
 0x2a8   :  { %825 = vmatprep.subr.mxu1 %v1057_v0 }
 0x2a9   :  { %v343_v33 = vpop.permute.xlu1 %342  ;;  %826 = vmatpush3.msra.mxu1 %v549_v32 }
 0x2aa   :  { %v345_v35 = vmul.f32 %v860_v21, %v343_v33 }
 0x2ac   :  { %v1234_v36 = vadd.f32 %v345_v35, %v341_v34  ;;  %v518_v34 = vld [vmem:[%s1289_s2 + $0x8] sm:$0xff]  ;;  %v517_v35 = vld [vmem:[%s1289_s2] sm:$0xff] }
 0x2ae   :  { %359 = vrot.lane.b32.xlu0 %v1234_v36, %s1060_s14 }
 0x320   :  { %v360_v38 = vpop.permute.xlu0 %359 }
 0x321   :  { %821 = vmatmul.mubr.msk.f32.vlgmr.msra.gmra.mxu0 %vm244_vm2, %v360_v38 }
 0x322   :  { %831 = vmatpush3.msra.mxu0 %v554_v37  ;;  %838 = vmatprep.mubr.msk.f32.mxu0 %vm1058_vm0, %v1057_v0 }
 0x323   :  { %832 = vmatprep.subr.mxu0 %v1057_v0 }
 0x324   :  { %833 = vmatpush3.msra.mxu0 %v553_v39 }
 0x325   :  { %834 = vmatprep.subr.mxu0 %v1057_v0 }
 0x326   :  { %835 = vmatpush3.msra.mxu0 %v552_v40 }
 0x327   :  { %836 = vmatprep.subr.mxu0 %v1057_v0 }
 0x328   :  { %837 = vmatpush3.msra.mxu0 %v551_v41 }
 0x329   :  { %839 = vmatmul.mubr.msk.f32.vlgmr.msra.gmra.mxu0 %vm244_vm2, %v360_v38 }
 0x3e1   :  { %v429_v49 = vpop.f32.mrf.mxu0 }
 0x3e2   :  { %v430_v50 = vadd.f32 %v765_v47, %v429_v49 }
 0x3e3   :  { %v822_v51 = vpop.f32.mrf.mxu0 }
 0x3e4   :  { %v442_v52 = vrot.slane %v430_v50, %v441_v48 }
 0x3e6   :  { %v443_v54 = vcombine.high %v442_v52, %v442_v52  ;;  %v450_v55 = vrot.slane %v442_v52, %v441_v48 }
 0x3e8   :  { %v457_v57 = vrot.slane %v443_v54, %v441_v48  ;;  %v461_v58 = vrot.slane %v450_v55, %v460_v53  ;;  %v768_v55 = vld [vmem:[#allocation12] ss:$0 sm:$0xff] }
 0x3e9   :  { %v710_v60 = vpop.f32.mrf.mxu0 }
 0x3ea   :  { %v465_v61 = vrot.slane %v457_v57, %v460_v53  ;;  %v468_v62 = vadd.f32 %v461_v58, %v433_v56  ;;  %v711_v33 = vadd.f32 %v770_v30, %v710_v60 }
 0x3eb   :  { %v840_v63 = vpop.f32.mrf.mxu0 }
 0x3ec   :  { %v469_v1 = vadd.f32 %v465_v61, %v434_v59  ;;  %863 = vtanh.f32 %v468_v62 }
 0x3ee   :  { %865 = vtanh.f32 %v469_v1 }
 0x3f9   :  { %v864_v3 = vpop.eup %863 }
 0x3fa   :  { %v479_v4 = vmul.f32 %v864_v3, %v767_v2 }
 0x3fb   :  { %v866_v5 = vpop.eup %865 }
 0x3fc   :  { %v481_v6 = vsel %vm163_vm1, %v479_v4, 0.0  ;;  %v480_v7 = vmul.f32 %v866_v5, %v767_v2 }
 0x3fd   :  { %482 = vadd.xlane.f32.xlu1 %v481_v6 }
 0x3fe   :  { %v484_v8 = vsel %vm163_vm1, %v480_v7, 0.0 }
 0x3ff   :  { %485 = vadd.xlane.f32.xlu0 %v484_v8 }
 0x486   :  { %v483_v11 = vpop.xlane.xlu1 %482 }
 0x487   :  { %v496_v14 = vrot.slane %v483_v11, %v495_v10 }
 0x488   :  { %v486_v13 = vpop.xlane.xlu0 %485 }
 0x489   :  { %v500_v15 = vrot.slane %v486_v13, %v495_v10 }
 0x48b   :  { %v502_v16 = vsel %vm501_vm3, %v500_v15, %v496_v14 }
 0x48c   :  { %v504_v17 = vsel %vm488_vm4, -1e+09, %v502_v16 }
 0x48d   :  { %v506_v18 = vsel %vm505_vm5, %v504_v17, -inf }
 0x48e   :  { %507 = vmax.xlane.f32.xlu0 %v506_v18 }
 0x517   :  { %v508_v19 = vpop.xlane.xlu0 %507 }
 0x518   :  { %v509_v20 = vsub.f32 %v504_v17, %v508_v19 }
 0x51a   :  { %v510_v21 = vmul.f32 1.442695, %v509_v20 }
 0x51c   :  { %867 = vpow2.f32 %v510_v21 }
 0x529   :  { %v868_v22 = vpop.eup %867 }
 0x52a   :  { %v512_v23 = vsel %vm505_vm5, %v868_v22, 0.0 }
 0x52b   :  { %513 = vadd.xlane.f32.xlu1 %v512_v23 }
 0x5b4   :  { %v514_v24 = vpop.xlane.xlu1 %513 }
 0x5b5   :  { %869 = vrcp.f32 %v514_v24 }
 0x5c2   :  { %v870_v26 = vpop.eup %869 }
 0x5c3   :  { %v516_v27 = vmul.f32 %v870_v26, %v868_v22 }
 0x5c5   :  { %v529_v28 = vrot.slane %v516_v27, %v528_v25  ;;  %v522_v29 = vrot.slane %v516_v27, %v460_v53 }
 0x5c7   :  { %531 = vbcast.lane.b32.xlu1 %v529_v28, 256  ;;  %524 = vbcast.lane.b32.xlu0 %v522_v29, 256 }
 0x5cb   :  { %722 = vrot.lane.b32.xlu1 %v711_v33, %s1059_s6 }
 0x639   :  { %v532_v37 = vpop.permute.xlu1 %531  ;;  %v525_v38 = vpop.permute.xlu0 %524 }
 0x63a   :  { %v534_v39 = vmul.f32 %v532_v37, %v518_v34  ;;  %v533_v40 = vmul.f32 %v525_v38, %v517_v35 }
 0x63c   :  { %v542_v41 = vsel %vm163_vm1, %v534_v39, 0.0  ;;  %v535_v42 = vsel %vm163_vm1, %v533_v40, 0.0 }
 0x63d   :  { %v543_v0 = vrot.slane %v542_v41, 4  ;;  %v536_v43 = vrot.slane %v535_v42, 4  ;;  %v723_v1 = vpop.permute.xlu1 %722 }
 0x63f   :  { %v544_v44 = vadd.f32 %v543_v0, %v542_v41  ;;  %v537_v45 = vadd.f32 %v536_v43, %v535_v42 }
 0x641   :  { %v545_v46 = vrot.slane %v544_v44, 2  ;;  %v538_v47 = vrot.slane %v537_v45, 2 }
 0x643   :  { %v546_v48 = vadd.f32 %v545_v46, %v544_v44  ;;  %v539_v49 = vadd.f32 %v538_v47, %v537_v45 }
 0x645   :  { %v547_v50 = vrot.slane %v546_v48, 1  ;;  %v540_v51 = vrot.slane %v539_v49, 1 }
 0x647   :  { %v548_v52 = vadd.f32 %v547_v50, %v546_v48  ;;  %v541_v53 = vadd.f32 %v540_v51, %v539_v49 }
 0x649   :  { %v564_v54 = vsel %vm501_vm3, %v548_v52, %v541_v53 }
 0x64a   :  { %828 = vmatmul.mubr.msk.f32.vlgmr.msra.gmra.mxu1 %vm163_vm1, %v564_v54 }
 0x70a   :  { %v633_v56 = vpop.f32.mrf.mxu1 }
 0x70b   :  { %v634_v57 = vadd.f32 %v768_v55, %v633_v56 }
 0x70c   :  { %v829_v58 = vpop.f32.mrf.mxu1 }
 0x70d   :  { %v714_v59 = vadd.f32 %v711_v33, %v634_v57 }
 0x70f   :  { %v772_v60 = vmul.f32 -1.442695, %v714_v59 }
 0x711   :  { %871 = vpow2.f32 %v772_v60 }
 0x71e   :  { %v872_v61 = vpop.eup %871 }
 0x71f   :  { %v718_v62 = vadd.f32 1.0, %v872_v61 }
 0x721   :  { %873 = vrcp.f32 %v718_v62 }
 0x72e   :  { %v874_v63 = vpop.eup %873 }
 0x72f   :  { %v725_v2 = vmul.f32 %v874_v63, %v723_v1  ;;  %v732_v6 = vsub.f32 1.0, %v874_v63  ;;  %v738_v8 = vmul.f32 %v874_v63, %v1234_v36 }
 0x731   :  { %727 = vrot.lane.b32.xlu0 %v725_v2, %s1059_s6 }
 0x7a3   :  { %v728_v3 = vpop.permute.xlu0 %727 }
 0x7a4   :  { %v730_v4 = vadd.f32 %v728_v3, %v634_v57 }
 0x7a6   :  { %875 = vtanh.f32 %v730_v4 }
 0x7b3   :  { %v876_v5 = vpop.eup %875 }
 0x7b4   :  { %734 = vrot.lane.b32.xlu1 %v876_v5, %s1060_s14 }
 0x7b8   :  { %744 = vrot.lane.b32.xlu1 %v564_v54, %s1061_s15 }
 0x826   :  { %v735_v7 = vpop.permute.xlu1 %734 }
 0x827   :  { %v737_v9 = vmul.f32 %v735_v7, %v732_v6 }
 0x829   :  { %v739_v10 = vadd.f32 %v738_v8, %v737_v9 }
 0x82a   :  { %v745_v11 = vpop.permute.xlu1 %744 }
 0x82b   :  { %741 = vrot.lane.b32.xlu0 %v739_v10, %s1060_s14 }
 0x89d   :  { %v742_v12 = vpop.permute.xlu0 %741 }
 0x89e   :  { %v747_v13 = vsel %vm244_vm2, %v742_v12, %v745_v11 }
 0x89f   :  { %v749_v14 = vsel %vm748_vm6, %v747_v13, 0.0 }
 0x8a0   :  { %750 = vst [vmem:[%s1303_s16] sm:$0x3] %v749_v14 }
 0x8a1   :  { %755 = vsyncpa [#allocation3], 1 }
 0x8a2   :  { %756 = vsyncpa [#allocation5], 1 }
 0x8a3   :  { %757 = vsyncpa [#allocation8], 1 }
 0x8a4   :  { %758 = vsyncpa [#allocation11], 1 }
 0x8a5   :  { %759 = vsyncpa [#allocation14], 1 }

</bundles_post_ra>
